<compile_context>
chip_gen: v7x
topology: tpu7x:2x2x1
jax: 0.10.0
libtpu: 0.0.40
codegen_flags: <defaults>
</compile_context>

<pallas_src>
import jax
import jax.numpy as jnp
from jax.experimental import pallas as pl
from jax.experimental.pallas import tpu as pltpu

_LANES = 128
_SUBLANES = 8
_MAX_TILE_ROWS = 8192          # 8192 x 128 x 4B = 4 MiB per f32 grid step
_UNROLL = 8                    # 8-row chunks folded per fori_loop iteration


def _make_minmax_kernel(tile_rows, n_valid_rows, needs_mask, dtype):
    """Kernel reducing a (tile_rows, 128) block to (8,128) f32 partial min/max."""
    n_chunks = tile_rows // _SUBLANES
    n_groups, rem = divmod(n_chunks, _UNROLL)

    if jnp.issubdtype(dtype, jnp.floating):
        lo_c, hi_c = float("-inf"), float("inf")
    else:
        info = jnp.iinfo(dtype)
        lo_c, hi_c = int(info.min), int(info.max)

    def kernel(x_ref, pmin_ref, pmax_ref):
        hi_v = jnp.asarray(hi_c, dtype=dtype)
        lo_v = jnp.asarray(lo_c, dtype=dtype)

        if needs_mask:
            base = pl.program_id(0) * tile_rows
            row_iota = jax.lax.broadcasted_iota(
                jnp.int32, (_SUBLANES, _LANES), 0)

        def consume(chunk_idx, a_min, a_max):
            start = chunk_idx * _SUBLANES
            if not isinstance(start, int):
                start = pl.multiple_of(start, _SUBLANES)
            blk = x_ref[pl.ds(start, _SUBLANES), :]      # (8, 128) native dtype
            if needs_mask:
                row = base + chunk_idx * _SUBLANES + row_iota
                valid = row < n_valid_rows
                blk_min = jnp.where(valid, blk, hi_v)
                blk_max = jnp.where(valid, blk, lo_v)
            else:
                blk_min = blk
                blk_max = blk
            return jnp.minimum(a_min, blk_min), jnp.maximum(a_max, blk_max)

        acc_min = jnp.full((_SUBLANES, _LANES), hi_c, dtype)
        acc_max = jnp.full((_SUBLANES, _LANES), lo_c, dtype)

        if n_groups > 0:
            def body(g, carry):
                a_min, a_max = carry
                for u in range(_UNROLL):                 # static unroll
                    a_min, a_max = consume(g * _UNROLL + u, a_min, a_max)
                return a_min, a_max
            acc_min, acc_max = jax.lax.fori_loop(
                0, n_groups, body, (acc_min, acc_max))

        for u in range(rem):                             # static remainder (<8)
            acc_min, acc_max = consume(n_groups * _UNROLL + u, acc_min, acc_max)

        pmin_ref[...] = acc_min.astype(jnp.float32)
        pmax_ref[...] = acc_max.astype(jnp.float32)

    return kernel


def _minmax_pallas(slab, rows, tile_rows):
    """Run the partial-reduction kernel over a (rows, 128) slab."""
    num_blocks = pl.cdiv(rows, tile_rows)
    needs_mask = (rows % tile_rows) != 0
    kernel = _make_minmax_kernel(tile_rows, rows, needs_mask, slab.dtype)

    in_bytes = rows * _LANES * slab.dtype.itemsize
    out_bytes = 2 * num_blocks * _SUBLANES * _LANES * 4

    pmin, pmax = pl.pallas_call(
        kernel,
        out_shape=(
            jax.ShapeDtypeStruct((num_blocks * _SUBLANES, _LANES), jnp.float32),
            jax.ShapeDtypeStruct((num_blocks * _SUBLANES, _LANES), jnp.float32),
        ),
        grid_spec=pltpu.PrefetchScalarGridSpec(
            num_scalar_prefetch=0,
            grid=(num_blocks,),
            in_specs=[pl.BlockSpec((tile_rows, _LANES), lambda i: (i, 0))],
            out_specs=[
                pl.BlockSpec((_SUBLANES, _LANES), lambda i: (i, 0)),
                pl.BlockSpec((_SUBLANES, _LANES), lambda i: (i, 0)),
            ],
        ),
        compiler_params=pltpu.CompilerParams(
            dimension_semantics=("parallel",),
        ),
        cost_estimate=pl.CostEstimate(
            flops=2 * rows * _LANES,
            transcendentals=0,
            bytes_accessed=in_bytes + out_bytes,
        ),
    )(slab)

    # Tiny final fold of the per-block partials (num_blocks*8*128 elements).
    return jnp.min(pmin), jnp.max(pmax)


def observer_forward(x):
    """Returns (x_passthrough, min_val, max_val) over ALL elements of x.

    The pass-through is the caller's original array (identity), so the kernel
    only reads the tensor once (no extra HBM write).
    NaN semantics: NaNs propagate into min/max (same as jnp.min / jnp.max).
    """
    total = x.size
    if total == 0:
        # empty tensor: nothing observed
        return x, jnp.float32(jnp.inf), jnp.float32(-jnp.inf)

    flat = x.reshape(-1)                       # contiguous: free bitcast
    bulk = (total // _LANES) * _LANES
    rows = bulk // _LANES

    have_kernel = rows >= _SUBLANES
    mn = mx = None

    if have_kernel:
        # Zero-copy reshape when total % 128 == 0 (the common case).
        # TODO(synk): when total % 128 != 0 this slice may materialize a copy;
        # a fully copy-free path would need a ragged 1-D BlockSpec / manual DMA.
        slab = flat[:bulk].reshape(rows, _LANES)
        tile_rows = min(_MAX_TILE_ROWS, (rows // _SUBLANES) * _SUBLANES)
        mn, mx = _minmax_pallas(slab, rows, tile_rows)
    else:
        bulk = 0  # too small for the kernel path; everything goes to the tail

    if bulk < total:
        tail = flat[bulk:]
        tmin = jnp.min(tail).astype(jnp.float32)
        tmax = jnp.max(tail).astype(jnp.float32)
        if mn is None:
            mn, mx = tmin, tmax
        else:
            mn = jnp.minimum(mn, tmin)
            mx = jnp.maximum(mx, tmax)

    return x, mn, mx


def calculate_qparams(min_val, max_val, dtype="qint8"):
    """Per-tensor affine qparams from observed min/max (plain-JAX glue)."""
    if dtype == "qint8":
        qmin, qmax = -128, 127
    else:  # quint8
        qmin, qmax = 0, 255
    # make sure zero is representable, as torch observers do
    min_val = jnp.minimum(min_val, 0.0)
    max_val = jnp.maximum(max_val, 0.0)
    scale = (max_val - min_val) / float(qmax - qmin)
    scale = jnp.maximum(scale, jnp.finfo(jnp.float32).eps)
    zero_point = qmin - jnp.round(min_val / scale)
    zero_point = jnp.clip(zero_point, qmin, qmax).astype(jnp.int32)
    return scale, zero_point


if __name__ == "__main__":
    key = jax.random.PRNGKey(0)
    # NCHW input consistent with a conv observer
    x = jax.random.normal(key, (2, 4, 16, 16), dtype=jnp.float32)

    y, mn, mx = observer_forward(x)
    scale, zp = calculate_qparams(mn, mx, dtype="qint8")
    jax.block_until_ready((y, mn, mx, scale, zp))

    # sanity checks against plain JAX
    assert jnp.allclose(y, x), "pass-through mismatch"
    assert jnp.allclose(mn, jnp.min(x)), "min mismatch"
    assert jnp.allclose(mx, jnp.max(x)), "max mismatch"

    # extra sanity: odd-sized tensor exercising the kernel + plain-JAX tail path
    x2 = jax.random.normal(jax.random.PRNGKey(1), (3, 5, 7, 11), dtype=jnp.float32)
    _, mn2, mx2 = observer_forward(x2)
    jax.block_until_ready((mn2, mx2))
    assert jnp.allclose(mn2, jnp.min(x2)), "min mismatch (odd size)"
    assert jnp.allclose(mx2, jnp.max(x2)), "max mismatch (odd size)"

    print("KERNEL_OK")
</pallas_src>

<mosaic_0001>
module attributes {stable_mosaic.version = 11 : i64} {
  func.func @kernel(%arg0: i32, %arg1: memref<16x128xf32, #tpu.memory_space<vmem>>, %arg2: memref<8x128xf32, #tpu.memory_space<vmem>>, %arg3: memref<8x128xf32, #tpu.memory_space<vmem>>) attributes {dimension_semantics = [#tpu.dimension_semantics<parallel>], iteration_bounds = array<i64: 1>, scalar_prefetch = 0 : i64, scratch_operands = 0 : i64, tpu.core_type = #tpu.core_type<tc>, window_params = [{transform_indices = @transform_0, window_bounds = array<i64: 16, 128>}, {transform_indices = @transform_1, window_bounds = array<i64: 8, 128>}, {transform_indices = @transform_2, window_bounds = array<i64: 8, 128>}]} {
    %cst = arith.constant 0x7F800000 : f32
    %0 = vector.broadcast %cst : f32 to vector<8x128xf32>
    %cst_0 = arith.constant 0xFF800000 : f32
    %1 = vector.broadcast %cst_0 : f32 to vector<8x128xf32>
    %c0 = arith.constant 0 : index
    %c0_1 = arith.constant 0 : index
    %2 = vector.load %arg1[%c0, %c0_1] : memref<16x128xf32, #tpu.memory_space<vmem>>, vector<8x128xf32>
    %3 = arith.minimumf %0, %2 : vector<8x128xf32>
    %4 = arith.maximumf %1, %2 : vector<8x128xf32>
    %c8 = arith.constant 8 : index
    %c0_2 = arith.constant 0 : index
    %5 = vector.load %arg1[%c8, %c0_2] : memref<16x128xf32, #tpu.memory_space<vmem>>, vector<8x128xf32>
    %6 = arith.minimumf %3, %5 : vector<8x128xf32>
    %7 = arith.maximumf %4, %5 : vector<8x128xf32>
    %c0_3 = arith.constant 0 : index
    %c0_4 = arith.constant 0 : index
    %8 = vector.load %arg2[%c0_3, %c0_4] : memref<8x128xf32, #tpu.memory_space<vmem>>, vector<8x128xf32>
    tpu.vector_store %arg2[%c0_3, %c0_4], %6 {strides = array<i32>} : memref<8x128xf32, #tpu.memory_space<vmem>>, vector<8x128xf32>,
    %c0_5 = arith.constant 0 : index
    %c0_6 = arith.constant 0 : index
    %9 = vector.load %arg3[%c0_5, %c0_6] : memref<8x128xf32, #tpu.memory_space<vmem>>, vector<8x128xf32>
    tpu.vector_store %arg3[%c0_5, %c0_6], %7 {strides = array<i32>} : memref<8x128xf32, #tpu.memory_space<vmem>>, vector<8x128xf32>,
    return
  }
  func.func @transform_0(%arg0: i32) -> (i32, i32) {
    %c0_i32 = arith.constant 0 : i32
    %c0_i32_0 = arith.constant 0 : i32
    return %arg0, %c0_i32 : i32, i32
  }
  func.func @transform_1(%arg0: i32) -> (i32, i32) {
    %c0_i32 = arith.constant 0 : i32
    %c0_i32_0 = arith.constant 0 : i32
    return %arg0, %c0_i32 : i32, i32
  }
  func.func @transform_2(%arg0: i32) -> (i32, i32) {
    %c0_i32 = arith.constant 0 : i32
    %c0_i32_0 = arith.constant 0 : i32
    return %arg0, %c0_i32 : i32, i32
  }
}

</mosaic_0001>

<bundles_post_ra>
// kernel: tpu_custom_call.1
= control target key start
LH: loop header
LB: loop body
LE: loop exit
PB: predicated region body
PF: predicated region fallthrough
CT: control target
= control target key end

     0   :  { %8 = vsyncpa [#allocation3], 0  ;;  %s194_s0 = inlined_call_operand.hbm [shape: f32[16,128], index: 0, kind: input, shape index: {}]   ;;  %s195_s1 = inlined_call_operand.hbm [shape: f32[8,128], index: 1, kind: output, shape index: {0}]   ;;  %s196_s2 = inlined_call_operand.hbm [shape: f32[8,128], index: 2, kind: output, shape index: {1}]  }
   0x1   :  { %9 = vsyncpa [#allocation4], 0 }
   0x2   :  { %10 = vsyncpa [#allocation7], 0  ;;  %s138_s9 = smov [#allocation2]   ;;  %s66_s13 = scalar_lea.hbm %s194_s0, 256 }
   0x3   :  { %s16_s10 = sshll.u32 %s138_s9, 4  ;;  %p67_p0 = scmp.ne.s32.totalorder %s194_s0, %s66_s13  ;;  %s17_s10 = int_to_ptr.vmem [resolvable:$true] %s16_s10 }
   0x4   :  { %p70_p1 = scmp.lt.u32.totalorder %s66_s13, %s194_s0 }
   0x6   :  { %p72_p2 = pnand %p70_p1, %p67_p0 }
   0x8   :  { %75 = shalt.err (!%p72_p2)
}
   0x9   :  { %s76_s18 = scalar_lea.vmem %s17_s10, 256  ;;  %p81_p4 = scmp.lt.s32.totalorder %s17_s10, %s17_s10 }
   0xa   :  { %p77_p3 = scmp.ne.s32.totalorder %s17_s10, %s76_s18  ;;  %p82_p5 = scmp.lt.s32.totalorder %s76_s18, %s76_s18 }
   0xc   :  { %p83_p6 = por %p82_p5, %p81_p4 }
   0xe   :  { %p84_p7 = pnand %p83_p6, %p77_p3 }
  0x10   :  { %87 = shalt.err (!%p84_p7)
}
  0x11   :  { %s139_s19 = smov 128   ;;  %s140_s20 = smov 8  }
  0x12   :  { %22 = dma.hbm_to_vmem [thread:$0]  %s194_s0, 256, %s17_s10, [#allocation3], %s139_s19, %s139_s19, %s140_s20  }
  0x13   :  { %132 = dma.done.wait [#allocation3], 256  }
  0x14   :  { %133 = vsyncadd [#allocation3], 4294967040  ;;  %s141_s23 = smov [#allocation5]   ;;  %s142_s25 = smov [#allocation6]   ;;  %v26_v0 = vld [vmem:[#allocation2] sm:$0xff]  ;;  %v27_v1 = vld [vmem:[#allocation2 + $0x8] sm:$0xff] }
  0x15   :  { %s38_s24 = sshll.u32 %s141_s23, 4  ;;  %s48_s26 = sshll.u32 %s142_s25, 4  ;;  %v28_v2 = vmin.f32 %v26_v0, %v27_v1  ;;  %v29_v3 = vmax.f32 %v26_v0, %v27_v1  ;;  %s39_s24 = int_to_ptr.vmem [resolvable:$true] %s38_s24  ;;  %s49_s26 = int_to_ptr.vmem [resolvable:$true] %s48_s26 }
  0x16   :  { %s88_s27 = scalar_lea.vmem %s39_s24, 128  ;;  %p93_p9 = scmp.lt.s32.totalorder %s39_s24, %s39_s24 }
  0x17   :  { %30 = vst [vmem:[#allocation5] sm:$0xff] %v28_v2  ;;  %31 = vst [vmem:[#allocation6] sm:$0xff] %v29_v3  ;;  %p89_p8 = scmp.ne.s32.totalorder %s39_s24, %s88_s27  ;;  %p94_p10 = scmp.lt.s32.totalorder %s88_s27, %s88_s27 }
  0x19   :  { %p95_p11 = por %p94_p10, %p93_p9 }
  0x1b   :  { %p96_p12 = pnand %p95_p11, %p89_p8 }
  0x1d   :  { %99 = shalt.err (!%p96_p12)
}
  0x1e   :  { %s100_s29 = scalar_lea.hbm %s195_s1, 128 }
  0x1f   :  { %p101_p13 = scmp.ne.s32.totalorder %s195_s1, %s100_s29  ;;  %p104_p0 = scmp.lt.u32.totalorder %s100_s29, %s195_s1 }
  0x21   :  { %p106_p1 = pnand %p104_p0, %p101_p13 }
  0x23   :  { %109 = shalt.err (!%p106_p1)
}
  0x24   :  { %41 = dma.vmem_to_hbm [thread:$0]  %s39_s24, 128, %s195_s1, [#allocation4]  }
  0x25   :  { %s110_s8 = scalar_lea.vmem %s49_s26, 128  ;;  %p115_p3 = scmp.lt.s32.totalorder %s49_s26, %s49_s26 }
  0x26   :  { %p111_p2 = scmp.ne.s32.totalorder %s49_s26, %s110_s8  ;;  %p116_p4 = scmp.lt.s32.totalorder %s110_s8, %s110_s8 }
  0x28   :  { %p117_p5 = por %p116_p4, %p115_p3 }
  0x2a   :  { %p118_p6 = pnand %p117_p5, %p111_p2 }
  0x2c   :  { %121 = shalt.err (!%p118_p6)
}
  0x2d   :  { %s122_s11 = scalar_lea.hbm %s196_s2, 128 }
  0x2e   :  { %p123_p7 = scmp.ne.s32.totalorder %s196_s2, %s122_s11  ;;  %p126_p8 = scmp.lt.u32.totalorder %s122_s11, %s196_s2 }
  0x30   :  { %p128_p9 = pnand %p126_p8, %p123_p7 }
  0x32   :  { %131 = shalt.err (!%p128_p9)
}
  0x33   :  { %51 = dma.vmem_to_hbm [thread:$0]  %s49_s26, 128, %s196_s2, [#allocation7]  }
  0x34   :  { %134 = dma.done.wait [#allocation4], 128  }
  0x35   :  { %135 = vsyncadd [#allocation4], 4294967168 }
  0x36   :  { %136 = dma.done.wait [#allocation7], 128  }
  0x37   :  { %137 = vsyncadd [#allocation7], 4294967168 }
  0x38   :  { %58 = vsyncpa [#allocation3], 1 }
  0x39   :  { %59 = vsyncpa [#allocation4], 1 }
  0x3a   :  { %60 = vsyncpa [#allocation7], 1 }

</bundles_post_ra>
